<compile_context>
chip_gen: v5e
topology: v5e:2x2
jax: 0.10.0
libtpu: 0.0.40
codegen_flags: <defaults>
</compile_context>

<pallas_src>
import jax
import jax.numpy as jnp
from jax import lax
from jax.experimental import pallas as pl
from jax.experimental.pallas import tpu as pltpu  # noqa: F401  (TPU backend)

# Small, forward-consistent shapes: inputSize = H*W, kernel (out channels) = K.
N, H, W, K = 2, 8, 8, 16
HW = H * W
NHW = N * HW
OUT_LANES = 128          # lane-dense output width (>= N); wrapper slices [:N]


def net_kernel(patches_ref, w10_ref, wfcb_ref, sel_ref, out_ref):
    # patches_ref : (10, N*HW)      9 im2col taps + ones row (conv-bias tap)
    # w10_ref     : (K+1, 10)       conv weight | conv-bias column; last row is
    #                               the unit "constant feature" generator
    # wfcb_ref    : (2, K+1, N*HW)  FC weight per class, laid out to match the
    #                               conv activation; plane k=K carries b_fc
    # sel_ref     : (N*HW, 128)     lane -> image one-hot selector
    # out_ref     : (2, 128)        out[c, n] = logits; columns >= N are zero

    # Conv (+ folded bias) as one MXU matmul, then ReLU on the VPU.
    acts = jnp.dot(w10_ref[...], patches_ref[...],
                   preferred_element_type=jnp.float32)        # (K+1, N*HW)
    acts = jnp.maximum(acts, 0.0)                             # constant row stays 1

    # FC: contract over the feature (sublane) axis per output class ...
    p0 = jnp.sum(wfcb_ref[0] * acts, axis=0, keepdims=True)   # (1, N*HW)
    p1 = jnp.sum(wfcb_ref[1] * acts, axis=0, keepdims=True)   # (1, N*HW)
    partial = jnp.concatenate([p0, p1], axis=0)               # (2, N*HW)

    # ... then reduce each image's lane block with a selector matmul
    # (also makes the output store lane-dense).
    out_ref[...] = jnp.dot(partial, sel_ref[...],
                           preferred_element_type=jnp.float32)  # (2, 128)


def net_tkzw2_forward(x, w_conv, b_conv, w_fc, b_fc):
    """x: (N, 1, H, W) NCHW float32, exactly like the PyTorch module."""
    n, _, h, w = x.shape
    k = w_conv.shape[0]
    hw = h * w
    nhw = n * hw

    # --- wrapper-side data rearrangement only (no model math beyond repacking) ---
    # im2col: 9 shifted views of the zero-padded image + a ones row (bias tap).
    xpad = jnp.pad(x[:, 0], ((0, 0), (1, 1), (1, 1)))         # (N, H+2, W+2)
    taps = [xpad[:, dy:dy + h, dx:dx + w].reshape(n, hw)
            for dy in range(3) for dx in range(3)]
    patches = jnp.stack(taps, axis=0).reshape(9, nhw)         # col = n*HW + p
    patches = jnp.concatenate(
        [patches, jnp.ones((1, nhw), jnp.float32)], axis=0)   # (10, N*HW)

    # Conv weights with bias folded in, plus a constant-feature generator row.
    w10 = jnp.concatenate([w_conv.reshape(k, 9), b_conv[:, None]], axis=1)
    const_row = jnp.zeros((1, 10), jnp.float32).at[0, 9].set(1.0)
    w10a = jnp.concatenate([w10, const_row], axis=0)          # (K+1, 10)

    # FC weights rearranged to the conv-activation layout (k on sublanes,
    # n*HW+p on lanes); extra plane k=K carries b_fc (applied once per image).
    wfc3 = jnp.broadcast_to(w_fc.reshape(2, k, 1, hw), (2, k, n, hw))
    bias_plane = jnp.zeros((2, 1, n, hw), jnp.float32).at[:, 0, :, 0].set(
        b_fc[:, None])
    wfcb = jnp.concatenate([wfc3, bias_plane], axis=1).reshape(2, k + 1, nhw)

    # Lane -> image selector; columns >= N reduce to zero (lane-dense output).
    sel = (jnp.arange(nhw)[:, None] // hw
           == jnp.arange(OUT_LANES)[None, :]).astype(jnp.float32)

    out = pl.pallas_call(
        net_kernel,
        out_shape=jax.ShapeDtypeStruct((2, OUT_LANES), jnp.float32),
    )(patches, w10a, wfcb, sel)
    return out[:, :n].T                                       # (N, 2)


if __name__ == "__main__":
    key = jax.random.PRNGKey(0)
    kx, kw1, kb1, kw2, kb2 = jax.random.split(key, 5)

    # Deterministic synthetic parameters (shapes from Net_tkzw2.__init__).
    x = jax.random.normal(kx, (N, 1, H, W), jnp.float32)
    w_conv = jax.random.normal(kw1, (K, 1, 3, 3), jnp.float32) * 0.1
    b_conv = jax.random.normal(kb1, (K,), jnp.float32) * 0.1
    w_fc = jax.random.normal(kw2, (2, HW * K), jnp.float32) * 0.05
    b_fc = jax.random.normal(kb2, (2,), jnp.float32) * 0.05

    y = jax.block_until_ready(net_tkzw2_forward(x, w_conv, b_conv, w_fc, b_fc))

    # Pure-JAX reference for correctness.
    conv = lax.conv_general_dilated(x, w_conv, (1, 1), ((1, 1), (1, 1)),
                                    dimension_numbers=("NCHW", "OIHW", "NCHW"))
    conv = jnp.maximum(conv + b_conv[None, :, None, None], 0.0)
    ref = conv.reshape(N, -1) @ w_fc.T + b_fc

    assert y.shape == (N, 2)
    assert jnp.allclose(y, ref, atol=1e-4, rtol=1e-4)
    print("KERNEL_OK")
</pallas_src>

<mosaic_0001>
module attributes {stable_mosaic.version = 11 : i64} {
  func.func @net_kernel(%arg0: memref<10x128xf32, #tpu.memory_space<vmem>>, %arg1: memref<17x10xf32, #tpu.memory_space<vmem>>, %arg2: memref<2x17x128xf32, #tpu.memory_space<vmem>>, %arg3: memref<128x128xf32, #tpu.memory_space<vmem>>, %arg4: memref<2x128xf32, #tpu.memory_space<vmem>>) attributes {dimension_semantics = [], scalar_prefetch = 0 : i64, scratch_operands = 0 : i64, tpu.core_type = #tpu.core_type<tc>} {
    %c0 = arith.constant 0 : index
    %c0_0 = arith.constant 0 : index
    %0 = vector.load %arg1[%c0, %c0_0] : memref<17x10xf32, #tpu.memory_space<vmem>>, vector<17x10xf32>
    %c0_1 = arith.constant 0 : index
    %c0_2 = arith.constant 0 : index
    %1 = vector.load %arg0[%c0_1, %c0_2] : memref<10x128xf32, #tpu.memory_space<vmem>>, vector<10x128xf32>
    %cst = arith.constant dense<0.000000e+00> : vector<17x128xf32>
    %2 = tpu.matmul %0, %1, %cst {dimension_numbers = #tpu.dot_dimension_numbers<[1], [0], [0], [1], [0, 0, 1, 1], [], []>} : vector<17x10xf32>, vector<10x128xf32>, vector<17x128xf32> -> vector<17x128xf32>
    %cst_3 = arith.constant 0.000000e+00 : f32
    %3 = vector.broadcast %cst_3 : f32 to vector<17x128xf32>
    %4 = arith.maximumf %2, %3 : vector<17x128xf32>
    %c0_4 = arith.constant 0 : index
    %c0_5 = arith.constant 0 : index
    %c0_6 = arith.constant 0 : index
    %5 = vector.load %arg2[%c0_4, %c0_5, %c0_6] : memref<2x17x128xf32, #tpu.memory_space<vmem>>, vector<1x17x128xf32>
    %6 = vector.shape_cast %5 : vector<1x17x128xf32> to vector<17x128xf32>
    %7 = arith.mulf %6, %4 : vector<17x128xf32>
    %cst_7 = arith.constant dense<0.000000e+00> : vector<128xf32>
    %8 = vector.multi_reduction <add>, %7, %cst_7 [0] : vector<17x128xf32> to vector<128xf32>
    %9 = vector.shape_cast %8 : vector<128xf32> to vector<1x128xf32>
    %c1 = arith.constant 1 : index
    %c0_8 = arith.constant 0 : index
    %c0_9 = arith.constant 0 : index
    %10 = vector.load %arg2[%c1, %c0_8, %c0_9] : memref<2x17x128xf32, #tpu.memory_space<vmem>>, vector<1x17x128xf32>
    %11 = vector.shape_cast %10 : vector<1x17x128xf32> to vector<17x128xf32>
    %12 = arith.mulf %11, %4 : vector<17x128xf32>
    %cst_10 = arith.constant dense<0.000000e+00> : vector<128xf32>
    %13 = vector.multi_reduction <add>, %12, %cst_10 [0] : vector<17x128xf32> to vector<128xf32>
    %14 = vector.shape_cast %13 : vector<128xf32> to vector<1x128xf32>
    %15 = tpu.concatenate %9, %14 in 0 : vector<1x128xf32>, vector<1x128xf32> -> vector<2x128xf32>
    %c0_11 = arith.constant 0 : index
    %c0_12 = arith.constant 0 : index
    %16 = vector.load %arg3[%c0_11, %c0_12] : memref<128x128xf32, #tpu.memory_space<vmem>>, vector<128x128xf32>
    %cst_13 = arith.constant dense<0.000000e+00> : vector<2x128xf32>
    %17 = tpu.matmul %15, %16, %cst_13 {dimension_numbers = #tpu.dot_dimension_numbers<[1], [0], [0], [1], [0, 0, 1, 1], [], []>} : vector<2x128xf32>, vector<128x128xf32>, vector<2x128xf32> -> vector<2x128xf32>
    %c0_14 = arith.constant 0 : index
    %c0_15 = arith.constant 0 : index
    %18 = vector.load %arg4[%c0_14, %c0_15] : memref<2x128xf32, #tpu.memory_space<vmem>>, vector<2x128xf32>
    tpu.vector_store %arg4[%c0_14, %c0_15], %17 {strides = array<i32>} : memref<2x128xf32, #tpu.memory_space<vmem>>, vector<2x128xf32>,
    return
  }
}

</mosaic_0001>

<bundles_post_ra>
// kernel: tpu_custom_call.1
= control target key start
LH: loop header
LB: loop body
LE: loop exit
PB: predicated region body
PF: predicated region fallthrough
CT: control target
= control target key end

     0   :  { %9 = vsyncpa [#allocation3], 0  ;;  %s303_s0 = inlined_call_operand.vmem [shape: f32[10,128], index: 0, kind: input, shape index: {}]   ;;  %s304_s1 = inlined_call_operand.vmem [shape: f32[17,10], index: 1, kind: input, shape index: {}]   ;;  %s305_s2 = inlined_call_operand.vmem [shape: f32[2,17,128], index: 2, kind: input, shape index: {}]   ;;  %s306_s3 = inlined_call_operand.hbm [shape: f32[128,128], index: 3, kind: input, shape index: {}]   ;;  %s307_s4 = inlined_call_operand.hbm [shape: f32[2,128], index: 4, kind: output, shape index: {}]  }
   0x1   :  { %10 = vsyncpa [#allocation4], 0  ;;  %s21_s17 = sshll.u32 %s306_s3, 4  ;;  %s232_s18 = smov [#allocation2]   ;;  %s22_s17 = int_to_ptr.hbm [resolvable:$true] %s21_s17 }
   0x2   :  { %s23_s19 = sshll.u32 %s232_s18, 4  ;;  %s233_s20 = smov 128   ;;  %s24_s19 = int_to_ptr.vmem [resolvable:$true] %s23_s19 }
   0x3   :  { %s234_s21 = smov 8  }
   0x4   :  { %29 = dma.hbm_to_vmem [thread:$0]  %s22_s17, 2048, %s24_s19, [#allocation3], %s233_s20, %s233_s20, %s234_s21  }
   0x5   :  { %228 = dma.done.wait [#allocation3], 2048  }
   0x6   :  { %229 = vsyncadd [#allocation3], 4294965248  ;;  %vm49_vm0 = vcmask 1041408   ;;  %v38_v0 = vld [vmem:[%s303_s0 + $0x8] sm:$0x3]  ;;  %v37_v1 = vld [vmem:[%s303_s0] sm:$0xff] }
   0x7   :  { %169 = vmatpush.msk.msra.mxu0 %vm49_vm0, %v38_v0  ;;  %v34_v2 = vld [vmem:[%s304_s1] sm:$0xff]  ;;  %vm39_vm1 = vcmask 80896   ;;  %v35_v3 = vld [vmem:[%s304_s1 + $0x8] sm:$0xff]  ;;  %v36_v4 = vld [vmem:[%s304_s1 + $0x10] sm:$0x1]  ;;  %vm89_vm2 = vcmask 1040384  }
   0x8   :  { %v130_v5 = vld [vmem:[#allocation2 + $0x78] sm:$0xff]  ;;  %v129_v6 = vld [vmem:[#allocation2 + $0x70] sm:$0xff]  ;;  %v128_v7 = vld [vmem:[#allocation2 + $0x68] sm:$0xff]  ;;  %s159_s18 = sshll.u32 %s307_s4, 4  ;;  %s160_s18 = int_to_ptr.hbm [resolvable:$true] %s159_s18 }
   0x9   :  { %68 = vmatpush.msra.mxu0 %v37_v1  ;;  %131 = vmatpush.msra.mxu1 %v130_v5  ;;  %v127_v8 = vld [vmem:[#allocation2 + $0x60] sm:$0xff]  ;;  %v126_v9 = vld [vmem:[#allocation2 + $0x58] sm:$0xff]  ;;  %v125_v10 = vld [vmem:[#allocation2 + $0x50] sm:$0xff] }
   0xa   :  { %170 = vmatmul.msk.f32.vlgmr.msra.gmra.mxu0 %vm39_vm1, %v34_v2  ;;  %v124_v11 = vld [vmem:[#allocation2 + $0x48] sm:$0xff]  ;;  %v123_v12 = vld [vmem:[#allocation2 + $0x40] sm:$0xff]  ;;  %v122_v13 = vld [vmem:[#allocation2 + $0x38] sm:$0xff] }
   0xb   :  { %132 = vmatpush.msra.mxu1 %v129_v6  ;;  %v121_v14 = vld [vmem:[#allocation2 + $0x30] sm:$0xff]  ;;  %v120_v15 = vld [vmem:[#allocation2 + $0x28] sm:$0xff]  ;;  %v119_v16 = vld [vmem:[#allocation2 + $0x20] sm:$0xff] }
   0xc   :  { %v118_v17 = vld [vmem:[#allocation2 + $0x18] sm:$0xff]  ;;  %v117_v18 = vld [vmem:[#allocation2 + $0x10] sm:$0xff]  ;;  %v116_v19 = vld [vmem:[#allocation2 + $0x8] sm:$0xff] }
   0xd   :  { %133 = vmatpush.msra.mxu1 %v128_v7  ;;  %v115_v21 = vld [vmem:[#allocation2] sm:$0xff]  ;;  %v83_v24 = vld [vmem:[%s305_s2 + $0x8] sm:$0xff]  ;;  %v173_v28 = vld [vmem:[%s305_s2 + $0x18] sm:$0xff] }
   0xe   :  { %v174_v25 = vld [vmem:[%s305_s2 + $0x20] sm:$0xff]  ;;  %v84_v32 = vld [vmem:[%s305_s2 + $0x10] sm:$0x1]  ;;  %v175_v33 = vld [vmem:[%s305_s2 + $0x28] sm:$0x1] }
   0xf   :  { %134 = vmatpush.msra.mxu1 %v127_v8  ;;  %v82_v27 = vld [vmem:[%s305_s2] sm:$0xff]  ;;  %s235_s2 = smov [#allocation5]  }
  0x10   :  { %s157_s15 = sshll.u32 %s235_s2, 4  ;;  %s158_s15 = int_to_ptr.vmem [resolvable:$true] %s157_s15 }
  0x11   :  { %135 = vmatpush.msra.mxu1 %v126_v9 }
  0x12   :  { %171 = vmatmul.msk.f32.gmra.mxu0 %vm39_vm1, %v35_v3 }
  0x13   :  { %136 = vmatpush.msra.mxu1 %v125_v10 }
  0x15   :  { %137 = vmatpush.msra.mxu1 %v124_v11 }
  0x17   :  { %138 = vmatpush.msra.mxu1 %v123_v12 }
  0x19   :  { %139 = vmatpush.msra.mxu1 %v122_v13 }
  0x1a   :  { %172 = vmatmul.msk.f32.gmra.mxu0 %vm39_vm1, %v36_v4 }
  0x1b   :  { %140 = vmatpush.msra.mxu1 %v121_v14 }
  0x1d   :  { %141 = vmatpush.msra.mxu1 %v120_v15 }
  0x1f   :  { %142 = vmatpush.msra.mxu1 %v119_v16 }
  0x21   :  { %143 = vmatpush.msra.mxu1 %v118_v17 }
  0x23   :  { %144 = vmatpush.msra.mxu1 %v117_v18 }
  0x25   :  { %145 = vmatpush.msra.mxu1 %v116_v19 }
  0x27   :  { %146 = vmatpush.msra.mxu1 %v115_v21 }
  0x87   :  { %v70_v20 = vpop.f32.mrf.mxu0 }
  0x88   :  { %v79_v26 = vmax.f32 %v70_v20, 0.0 }
  0x8a   :  { %v85_v35 = vmul.f32 %v82_v27, %v79_v26  ;;  %v102_v36 = vmul.f32 %v173_v28, %v79_v26 }
  0x8f   :  { %v73_v22 = vpop.f32.mrf.mxu0 }
  0x90   :  { %v80_v23 = vmax.f32 %v73_v22, 0.0 }
  0x92   :  { %v86_v29 = vmul.f32 %v83_v24, %v80_v23  ;;  %v103_v30 = vmul.f32 %v174_v25, %v80_v23 }
  0x94   :  { %v88_v39 = vadd.f32 %v86_v29, %v85_v35  ;;  %v105_v40 = vadd.f32 %v103_v30, %v102_v36 }
  0x97   :  { %v76_v31 = vpop.f32.mrf.mxu0 }
  0x98   :  { %v81_v34 = vmax.f32 %v76_v31, 0.0 }
  0x9a   :  { %v87_v37 = vmul.f32 %v84_v32, %v81_v34  ;;  %v104_v38 = vmul.f32 %v175_v33, %v81_v34 }
  0x9c   :  { %v90_v41 = vsel %vm89_vm2, %v87_v37, 0.0  ;;  %v106_v42 = vsel %vm89_vm2, %v104_v38, 0.0 }
  0x9d   :  { %v91_v43 = vadd.f32 %v90_v41, %v88_v39  ;;  %v107_v44 = vadd.f32 %v106_v42, %v105_v40 }
  0x9f   :  { %v92_v45 = vrot.slane %v91_v43, 4  ;;  %v108_v46 = vrot.slane %v107_v44, 4 }
  0xa1   :  { %v93_v47 = vadd.f32 %v92_v45, %v91_v43  ;;  %v109_v48 = vadd.f32 %v108_v46, %v107_v44 }
  0xa3   :  { %v94_v49 = vrot.slane %v93_v47, 2  ;;  %v110_v50 = vrot.slane %v109_v48, 2 }
  0xa5   :  { %v95_v51 = vadd.f32 %v94_v49, %v93_v47  ;;  %v111_v52 = vadd.f32 %v110_v50, %v109_v48 }
  0xa7   :  { %v96_v53 = vrot.slane %v95_v51, 1  ;;  %v112_v54 = vrot.slane %v111_v52, 1 }
  0xa9   :  { %v97_v55 = vadd.f32 %v96_v53, %v95_v51  ;;  %v113_v56 = vadd.f32 %v112_v54, %v111_v52 }
  0xab   :  { %v114_v57 = vsel %vm89_vm2, %v97_v55, %v113_v56 }
  0xac   :  { %147 = vmatmul.f32.vlgmr.msra.gmra.mxu1 %v114_v57 }
 0x129   :  { %v148_v58 = vpop.f32.mrf.mxu1 }
 0x12a   :  { %151 = vst [vmem:[#allocation5] sm:$0x3] %v148_v58 }
 0x12b   :  { %162 = dma.vmem_to_hbm [thread:$0]  %s158_s15, 32, %s160_s18, [#allocation4]  }
 0x12c   :  { %230 = dma.done.wait [#allocation4], 32  }
 0x12d   :  { %231 = vsyncadd [#allocation4], 4294967264 }
 0x12e   :  { %167 = vsyncpa [#allocation3], 1 }
 0x12f   :  { %168 = vsyncpa [#allocation4], 1 }

</bundles_post_ra>
